<compile_context>
chip_gen: v5e
topology: v5e:2x2
jax: 0.10.0
libtpu: 0.0.40
codegen_flags: <defaults>
</compile_context>

<pallas_src>
import math
from functools import partial

import jax
import jax.numpy as jnp
from jax.experimental import pallas as pl
from jax.experimental.pallas import tpu as pltpu


_INV_SQRT2 = 1.0 / math.sqrt(2.0)


def _erf(x):
    # Abramowitz & Stegun 7.1.26 (max abs err ~1.5e-7); exp/mul/add/select only.
    # TODO(synk): switch to lax.erf for bit-exact GELU once it has a Mosaic lowering.
    a1, a2, a3, a4, a5 = 0.254829592, -0.284496736, 1.421413741, -1.453152027, 1.061405429
    p = 0.3275911
    s = jnp.where(x >= 0.0, 1.0, -1.0)
    ax = jnp.abs(x)
    t = 1.0 / (1.0 + p * ax)
    poly = ((((a5 * t + a4) * t + a3) * t + a2) * t + a1) * t
    return s * (1.0 - poly * jnp.exp(-ax * ax))


def _gelu_exact(x):
    # nn.GELU() default (approximate='none').
    return 0.5 * x * (1.0 + _erf(x * _INV_SQRT2))


def _layernorm(x, gamma, beta, eps=1e-5):
    # Fused statistics: E[x] and E[x^2] in one pass; var clamped at 0 to guard the
    # E[x^2] - E[x]^2 cancellation (PyTorch computes variance about the mean).
    mean = jnp.mean(x, axis=-1, keepdims=True)
    mean_sq = jnp.mean(x * x, axis=-1, keepdims=True)
    var = jnp.maximum(mean_sq - mean * mean, 0.0)
    return (x - mean) * jax.lax.rsqrt(var + eps) * gamma + beta


def encoder_kernel(x_ref,
                   ln1_g_ref, ln1_b_ref,
                   wqkv_ref, bqkv_ref,
                   wout_ref, bout_ref,
                   ln2_g_ref, ln2_b_ref,
                   w1_ref, b1_ref,
                   w2_ref, b2_ref,
                   out_ref, attnw_ref,
                   *, num_heads, b_tile, seq):
    H, Bt, S = num_heads, b_tile, seq
    x = x_ref[...]                                    # (Mt, D) f32, Mt = Bt*S rows
    Mt, D = x.shape
    dh = D // H

    # ---- Multi-head self-attention on norm1(x) ----
    # 1/sqrt(dh) is pre-folded into the Q columns of wqkv/bqkv (wrapper prep).
    nx = _layernorm(x, ln1_g_ref[...], ln1_b_ref[...])
    qkv = jnp.dot(nx.astype(jnp.bfloat16), wqkv_ref[...],
                  preferred_element_type=jnp.float32) + bqkv_ref[...]     # (Mt, 3D) f32

    # Leading-dim split only (last dim unchanged); cast to bf16 once so the head
    # gather and both attention matmuls operate on half-width data.
    q = qkv[:, 0:D].reshape(Bt, S, D).astype(jnp.bfloat16)
    k = qkv[:, D:2 * D].reshape(Bt, S, D).astype(jnp.bfloat16)
    v = qkv[:, 2 * D:3 * D].reshape(Bt, S, D).astype(jnp.bfloat16)

    # Gather heads into one batched dim g = h*Bt + b -> (H*Bt, S, dh): static lane
    # slices + a leading-dim concat (no transposes).
    def to_heads(t):
        return jnp.concatenate([t[:, :, h * dh:(h + 1) * dh] for h in range(H)], axis=0)

    qh, kh, vh = to_heads(q), to_heads(k), to_heads(v)

    # One head-batched scores matmul, one batched softmax, one head-batched probs @ v.
    scores = jnp.einsum('gqd,gkd->gqk', qh, kh, preferred_element_type=jnp.float32)
    scores = scores - jnp.max(scores, axis=-1, keepdims=True)
    e = jnp.exp(scores)                                                   # f32
    inv_denom = 1.0 / jnp.sum(e, axis=-1, keepdims=True)                  # one recip per row
    probs = e * inv_denom                                                 # (H*Bt, S, S) f32
    ctx = jnp.einsum('gqk,gkd->gqd', probs.astype(jnp.bfloat16), vh,
                     preferred_element_type=jnp.float32)                  # (H*Bt, S, dh) f32

    # Head-averaged attention probabilities (average_attn_weights=True), one pass.
    attnw_ref[...] = jnp.sum(probs.reshape(H, Bt, S, S), axis=0) * (1.0 / H)

    # Output projection as an accumulation over heads: no lane-axis concat, each
    # head's rows of wout are sublane-aligned static slices.
    wout = wout_ref[...]                                                  # (D, D) bf16
    attn_out = bout_ref[...]                                              # (1, D) f32
    for h in range(H):
        ctx_h = ctx[h * Bt:(h + 1) * Bt].reshape(Mt, dh).astype(jnp.bfloat16)
        attn_out = attn_out + jnp.dot(ctx_h, wout[h * dh:(h + 1) * dh, :],
                                      preferred_element_type=jnp.float32)

    x1 = x + attn_out                                 # residual 1

    # ---- FFN on norm2(x1) ----  (Dropout layers are identity at inference.)
    nx2 = _layernorm(x1, ln2_g_ref[...], ln2_b_ref[...])
    hdn = _gelu_exact(jnp.dot(nx2.astype(jnp.bfloat16), w1_ref[...],
                              preferred_element_type=jnp.float32) + b1_ref[...])
    ffn = jnp.dot(hdn.astype(jnp.bfloat16), w2_ref[...],
                  preferred_element_type=jnp.float32) + b2_ref[...]
    out_ref[...] = x1 + ffn                           # residual 2


def prepare_params(raw, num_heads):
    """One-time parameter prep: fold 1/sqrt(dh) into the Q columns of the in-proj and
    cast matmul weights to bf16 (biases / LayerNorm params stay f32)."""
    D = raw["wout"].shape[0]
    dh = D // num_heads
    scale = 1.0 / math.sqrt(dh)
    wqkv = raw["wqkv"].astype(jnp.float32).at[:, 0:D].multiply(scale)
    bqkv = raw["bqkv"].astype(jnp.float32).at[:, 0:D].multiply(scale)
    return dict(
        ln1_g=raw["ln1_g"].astype(jnp.float32), ln1_b=raw["ln1_b"].astype(jnp.float32),
        wqkv=wqkv.astype(jnp.bfloat16), bqkv=bqkv,
        wout=raw["wout"].astype(jnp.bfloat16), bout=raw["bout"].astype(jnp.float32),
        ln2_g=raw["ln2_g"].astype(jnp.float32), ln2_b=raw["ln2_b"].astype(jnp.float32),
        w1=raw["w1"].astype(jnp.bfloat16), b1=raw["b1"].astype(jnp.float32),
        w2=raw["w2"].astype(jnp.bfloat16), b2=raw["b2"].astype(jnp.float32),
    )


def _vmem_limit_bytes(m_tile, b_tile, S, D, H):
    # Resident weights (bf16) + per-step activation tiles (f32), double-buffered,
    # plus headroom; clamped to [16 MiB, 64 MiB] so it is valid on every generation.
    bf16, f32 = 2, 4
    weights = bf16 * (3 * D * D + D * D + 4 * D * D + 4 * D * D) \
        + f32 * (3 * D + D + 4 * D + D + 4 * D)
    acts = f32 * (m_tile * D * 6 + m_tile * 3 * D + m_tile * 4 * D) \
        + f32 * (H + 1) * b_tile * S * S
    limit = 2 * (weights + acts) + (8 << 20)
    return int(min(max(limit, 16 << 20), 64 << 20))


def transformer_encoder_block(x, params, num_heads, *, b_tile=None):
    """Pre-norm transformer encoder block (Temporal/SpatialTransformerEncoder forward).

    x: (B, S, D) float32; params from prepare_params().
    Returns (out (B, S, D), attn_weights (B, S, S))."""
    B, S, D = x.shape
    if b_tile is None:
        # Whole sequences per tile; target a few hundred rows per grid step.
        b_tile = max(1, min(B, max(1, 256 // S)))
        while B % b_tile:
            b_tile -= 1
    assert B % b_tile == 0, "tiles must hold whole sequences"
    m_tile = b_tile * S
    assert (m_tile % 8 == 0) or (b_tile == B), "tile rows should be sublane-aligned"
    grid = (B // b_tile,)
    x2d = x.reshape(B * S, D)                         # fold batch into the matmul M dim

    kernel = partial(encoder_kernel, num_heads=num_heads, b_tile=b_tile, seq=S)

    def resident(shape):                              # VMEM-resident across all steps
        n = len(shape)
        return pl.BlockSpec(shape, lambda i, _n=n: (0,) * _n)

    in_specs = [
        pl.BlockSpec((m_tile, D), lambda i: (i, 0)),  # x tile (streamed / pipelined)
        resident((1, D)), resident((1, D)),           # norm1 gamma/beta
        resident((D, 3 * D)), resident((1, 3 * D)),   # in_proj weight (bf16) / bias
        resident((D, D)), resident((1, D)),           # out_proj weight (bf16) / bias
        resident((1, D)), resident((1, D)),           # norm2 gamma/beta
        resident((D, 4 * D)), resident((1, 4 * D)),   # ffn linear1 (bf16) / bias
        resident((4 * D, D)), resident((1, D)),       # ffn linear2 (bf16) / bias
    ]
    out_specs = [
        pl.BlockSpec((m_tile, D), lambda i: (i, 0)),          # encoder output tile
        pl.BlockSpec((b_tile, S, S), lambda i: (i, 0, 0)),    # head-averaged attn weights
    ]
    out_shape = [
        jax.ShapeDtypeStruct((B * S, D), jnp.float32),
        jax.ShapeDtypeStruct((B, S, S), jnp.float32),
    ]
    out2d, attn_w = pl.pallas_call(
        kernel,
        grid=grid,
        in_specs=in_specs,
        out_specs=out_specs,
        out_shape=out_shape,
        compiler_params=pltpu.CompilerParams(
            dimension_semantics=("parallel",),        # batch tiles shard across TCs (v7x)
            vmem_limit_bytes=_vmem_limit_bytes(m_tile, b_tile, S, D, num_heads)),
    )(x2d,
      params["ln1_g"], params["ln1_b"],
      params["wqkv"], params["bqkv"],
      params["wout"], params["bout"],
      params["ln2_g"], params["ln2_b"],
      params["w1"], params["b1"],
      params["w2"], params["b2"])
    return out2d.reshape(B, S, D), attn_w


def _reference(x, p, num_heads):
    # Pure-JAX f32 mirror of the PyTorch block for a self-check (uses the RAW params).
    B, S, D = x.shape
    H = num_heads
    dh = D // H
    nx = _layernorm(x, p["ln1_g"], p["ln1_b"])
    qkv = nx @ p["wqkv"] + p["bqkv"]
    q = qkv[..., 0:D] * (1.0 / math.sqrt(dh))
    k = qkv[..., D:2 * D]
    v = qkv[..., 2 * D:3 * D]
    qh = q.reshape(B, S, H, dh).transpose(0, 2, 1, 3)
    kh = k.reshape(B, S, H, dh).transpose(0, 2, 1, 3)
    vh = v.reshape(B, S, H, dh).transpose(0, 2, 1, 3)
    probs = jax.nn.softmax(jnp.einsum('bhqd,bhkd->bhqk', qh, kh), axis=-1)
    ctx = jnp.einsum('bhqk,bhkd->bhqd', probs, vh).transpose(0, 2, 1, 3).reshape(B, S, D)
    attn_out = ctx @ p["wout"] + p["bout"]
    x1 = x + attn_out
    nx2 = _layernorm(x1, p["ln2_g"], p["ln2_b"])
    ffn = _gelu_exact(nx2 @ p["w1"] + p["b1"]) @ p["w2"] + p["b2"]
    return x1 + ffn, probs.mean(axis=1)


if __name__ == "__main__":
    # Small shapes consistent with the module: latent_size=32, num_heads=4, seq=8, batch=2.
    B, S, D, H = 2, 8, 32, 4
    key = jax.random.PRNGKey(0)
    ks = jax.random.split(key, 10)
    sc = 0.02

    raw = dict(
        ln1_g=jnp.ones((1, D), jnp.float32),
        ln1_b=jnp.zeros((1, D), jnp.float32),
        wqkv=sc * jax.random.normal(ks[0], (D, 3 * D), jnp.float32),
        bqkv=sc * jax.random.normal(ks[1], (1, 3 * D), jnp.float32),
        wout=sc * jax.random.normal(ks[2], (D, D), jnp.float32),
        bout=sc * jax.random.normal(ks[3], (1, D), jnp.float32),
        ln2_g=jnp.ones((1, D), jnp.float32),
        ln2_b=jnp.zeros((1, D), jnp.float32),
        w1=sc * jax.random.normal(ks[4], (D, 4 * D), jnp.float32),
        b1=sc * jax.random.normal(ks[5], (1, 4 * D), jnp.float32),
        w2=sc * jax.random.normal(ks[6], (4 * D, D), jnp.float32),
        b2=sc * jax.random.normal(ks[7], (1, D), jnp.float32),
    )
    x = jax.random.normal(ks[8], (B, S, D), jnp.float32)

    params = prepare_params(raw, H)
    # b_tile=1 -> grid=(2,) so the pipelined, batch-parallel path is exercised even
    # at these toy shapes (the default heuristic would fold the whole batch here).
    out, attn_w = transformer_encoder_block(x, params, num_heads=H, b_tile=1)
    jax.block_until_ready((out, attn_w))
    assert out.shape == (B, S, D) and attn_w.shape == (B, S, S)

    # Numerical self-check against a pure-JAX f32 reference.  Tolerances account for
    # the bf16 matmul operands (f32 accumulation) used on the MXU path.
    ref_out, ref_aw = _reference(x, raw, H)
    assert float(jnp.max(jnp.abs(out - ref_out))) < 1e-2
    assert float(jnp.max(jnp.abs(attn_w - ref_aw))) < 3e-3

    print("KERNEL_OK")
</pallas_src>

<mosaic_0001>
module attributes {stable_mosaic.version = 11 : i64} {
  func.func @encoder_kernel(%arg0: i32, %arg1: memref<8x32xf32, #tpu.memory_space<vmem>>, %arg2: memref<1x32xf32, #tpu.memory_space<vmem>>, %arg3: memref<1x32xf32, #tpu.memory_space<vmem>>, %arg4: memref<32x96xbf16, #tpu.memory_space<vmem>>, %arg5: memref<1x96xf32, #tpu.memory_space<vmem>>, %arg6: memref<32x32xbf16, #tpu.memory_space<vmem>>, %arg7: memref<1x32xf32, #tpu.memory_space<vmem>>, %arg8: memref<1x32xf32, #tpu.memory_space<vmem>>, %arg9: memref<1x32xf32, #tpu.memory_space<vmem>>, %arg10: memref<32x128xbf16, #tpu.memory_space<vmem>>, %arg11: memref<1x128xf32, #tpu.memory_space<vmem>>, %arg12: memref<128x32xbf16, #tpu.memory_space<vmem>>, %arg13: memref<1x32xf32, #tpu.memory_space<vmem>>, %arg14: memref<8x32xf32, #tpu.memory_space<vmem>>, %arg15: memref<1x8x8xf32, #tpu.memory_space<vmem>>) attributes {dimension_semantics = [#tpu.dimension_semantics<parallel>], iteration_bounds = array<i64: 2>, scalar_prefetch = 0 : i64, scratch_operands = 0 : i64, tpu.core_type = #tpu.core_type<tc>, window_params = [{transform_indices = @transform_0, window_bounds = array<i64: 8, 32>}, {pipeline_mode = #tpu.pipeline_mode<synchronous>, transform_indices = @transform_1, window_bounds = array<i64: 1, 32>}, {pipeline_mode = #tpu.pipeline_mode<synchronous>, transform_indices = @transform_2, window_bounds = array<i64: 1, 32>}, {pipeline_mode = #tpu.pipeline_mode<synchronous>, transform_indices = @transform_3, window_bounds = array<i64: 32, 96>}, {pipeline_mode = #tpu.pipeline_mode<synchronous>, transform_indices = @transform_4, window_bounds = array<i64: 1, 96>}, {pipeline_mode = #tpu.pipeline_mode<synchronous>, transform_indices = @transform_5, window_bounds = array<i64: 32, 32>}, {pipeline_mode = #tpu.pipeline_mode<synchronous>, transform_indices = @transform_6, window_bounds = array<i64: 1, 32>}, {pipeline_mode = #tpu.pipeline_mode<synchronous>, transform_indices = @transform_7, window_bounds = array<i64: 1, 32>}, {pipeline_mode = #tpu.pipeline_mode<synchronous>, transform_indices = @transform_8, window_bounds = array<i64: 1, 32>}, {pipeline_mode = #tpu.pipeline_mode<synchronous>, transform_indices = @transform_9, window_bounds = array<i64: 32, 128>}, {pipeline_mode = #tpu.pipeline_mode<synchronous>, transform_indices = @transform_10, window_bounds = array<i64: 1, 128>}, {pipeline_mode = #tpu.pipeline_mode<synchronous>, transform_indices = @transform_11, window_bounds = array<i64: 128, 32>}, {pipeline_mode = #tpu.pipeline_mode<synchronous>, transform_indices = @transform_12, window_bounds = array<i64: 1, 32>}, {transform_indices = @transform_13, window_bounds = array<i64: 8, 32>}, {transform_indices = @transform_14, window_bounds = array<i64: 1, 8, 8>}]} {
    %c0 = arith.constant 0 : index
    %c0_0 = arith.constant 0 : index
    %0 = vector.load %arg1[%c0, %c0_0] : memref<8x32xf32, #tpu.memory_space<vmem>>, vector<8x32xf32>
    %c0_1 = arith.constant 0 : index
    %c0_2 = arith.constant 0 : index
    %1 = vector.load %arg2[%c0_1, %c0_2] : memref<1x32xf32, #tpu.memory_space<vmem>>, vector<1x32xf32>
    %c0_3 = arith.constant 0 : index
    %c0_4 = arith.constant 0 : index
    %2 = vector.load %arg3[%c0_3, %c0_4] : memref<1x32xf32, #tpu.memory_space<vmem>>, vector<1x32xf32>
    %cst = arith.constant dense<0.000000e+00> : vector<8xf32>
    %3 = vector.multi_reduction <add>, %0, %cst [1] : vector<8x32xf32> to vector<8xf32>
    %4 = vector.shape_cast %3 : vector<8xf32> to vector<8x1xf32>
    %cst_5 = arith.constant 3.200000e+01 : f32
    %5 = vector.broadcast %cst_5 : f32 to vector<8x1xf32>
    %6 = arith.divf %4, %5 : vector<8x1xf32>
    %7 = arith.mulf %0, %0 : vector<8x32xf32>
    %cst_6 = arith.constant dense<0.000000e+00> : vector<8xf32>
    %8 = vector.multi_reduction <add>, %7, %cst_6 [1] : vector<8x32xf32> to vector<8xf32>
    %9 = vector.shape_cast %8 : vector<8xf32> to vector<8x1xf32>
    %cst_7 = arith.constant 3.200000e+01 : f32
    %10 = vector.broadcast %cst_7 : f32 to vector<8x1xf32>
    %11 = arith.divf %9, %10 : vector<8x1xf32>
    %12 = arith.mulf %6, %6 : vector<8x1xf32>
    %13 = arith.subf %11, %12 : vector<8x1xf32>
    %cst_8 = arith.constant 0.000000e+00 : f32
    %14 = vector.broadcast %cst_8 : f32 to vector<8x1xf32>
    %15 = arith.maximumf %13, %14 : vector<8x1xf32>
    %16 = vector.broadcast %6 : vector<8x1xf32> to vector<8x32xf32>
    %17 = arith.subf %0, %16 : vector<8x32xf32>
    %cst_9 = arith.constant 9.99999974E-6 : f32
    %18 = vector.broadcast %cst_9 : f32 to vector<8x1xf32>
    %19 = arith.addf %15, %18 : vector<8x1xf32>
    %20 = math.rsqrt %19 : vector<8x1xf32>
    %21 = vector.broadcast %20 : vector<8x1xf32> to vector<8x32xf32>
    %22 = arith.mulf %17, %21 : vector<8x32xf32>
    %23 = vector.broadcast %1 : vector<1x32xf32> to vector<8x32xf32>
    %24 = arith.mulf %22, %23 : vector<8x32xf32>
    %25 = vector.broadcast %2 : vector<1x32xf32> to vector<8x32xf32>
    %26 = arith.addf %24, %25 : vector<8x32xf32>
    %27 = arith.truncf %26 : vector<8x32xf32> to vector<8x32xbf16>
    %c0_10 = arith.constant 0 : index
    %c0_11 = arith.constant 0 : index
    %28 = vector.load %arg4[%c0_10, %c0_11] : memref<32x96xbf16, #tpu.memory_space<vmem>>, vector<32x96xbf16>
    %cst_12 = arith.constant dense<0.000000e+00> : vector<8x96xf32>
    %29 = tpu.matmul %27, %28, %cst_12 {dimension_numbers = #tpu.dot_dimension_numbers<[1], [0], [0], [1], [0, 0, 1, 1], [], []>} : vector<8x32xbf16>, vector<32x96xbf16>, vector<8x96xf32> -> vector<8x96xf32>
    %c0_13 = arith.constant 0 : index
    %c0_14 = arith.constant 0 : index
    %30 = vector.load %arg5[%c0_13, %c0_14] : memref<1x96xf32, #tpu.memory_space<vmem>>, vector<1x96xf32>
    %31 = vector.broadcast %30 : vector<1x96xf32> to vector<8x96xf32>
    %32 = arith.addf %29, %31 : vector<8x96xf32>
    %33 = vector.extract_strided_slice %32 {offsets = [0, 0], sizes = [8, 32], strides = [1, 1]} : vector<8x96xf32> to vector<8x32xf32>
    %34 = vector.shape_cast %33 : vector<8x32xf32> to vector<1x8x32xf32>
    %35 = arith.truncf %34 : vector<1x8x32xf32> to vector<1x8x32xbf16>
    %36 = vector.extract_strided_slice %32 {offsets = [0, 32], sizes = [8, 32], strides = [1, 1]} : vector<8x96xf32> to vector<8x32xf32>
    %37 = vector.shape_cast %36 : vector<8x32xf32> to vector<1x8x32xf32>
    %38 = arith.truncf %37 : vector<1x8x32xf32> to vector<1x8x32xbf16>
    %39 = vector.extract_strided_slice %32 {offsets = [0, 64], sizes = [8, 32], strides = [1, 1]} : vector<8x96xf32> to vector<8x32xf32>
    %40 = vector.shape_cast %39 : vector<8x32xf32> to vector<1x8x32xf32>
    %41 = arith.truncf %40 : vector<1x8x32xf32> to vector<1x8x32xbf16>
    %42 = vector.extract_strided_slice %35 {offsets = [0, 0, 0], sizes = [1, 8, 8], strides = [1, 1, 1]} : vector<1x8x32xbf16> to vector<1x8x8xbf16>
    %43 = vector.extract_strided_slice %35 {offsets = [0, 0, 8], sizes = [1, 8, 8], strides = [1, 1, 1]} : vector<1x8x32xbf16> to vector<1x8x8xbf16>
    %44 = vector.extract_strided_slice %35 {offsets = [0, 0, 16], sizes = [1, 8, 8], strides = [1, 1, 1]} : vector<1x8x32xbf16> to vector<1x8x8xbf16>
    %45 = vector.extract_strided_slice %35 {offsets = [0, 0, 24], sizes = [1, 8, 8], strides = [1, 1, 1]} : vector<1x8x32xbf16> to vector<1x8x8xbf16>
    %46 = tpu.concatenate %42, %43, %44, %45 in 0 : vector<1x8x8xbf16>, vector<1x8x8xbf16>, vector<1x8x8xbf16>, vector<1x8x8xbf16> -> vector<4x8x8xbf16>
    %47 = vector.extract_strided_slice %38 {offsets = [0, 0, 0], sizes = [1, 8, 8], strides = [1, 1, 1]} : vector<1x8x32xbf16> to vector<1x8x8xbf16>
    %48 = vector.extract_strided_slice %38 {offsets = [0, 0, 8], sizes = [1, 8, 8], strides = [1, 1, 1]} : vector<1x8x32xbf16> to vector<1x8x8xbf16>
    %49 = vector.extract_strided_slice %38 {offsets = [0, 0, 16], sizes = [1, 8, 8], strides = [1, 1, 1]} : vector<1x8x32xbf16> to vector<1x8x8xbf16>
    %50 = vector.extract_strided_slice %38 {offsets = [0, 0, 24], sizes = [1, 8, 8], strides = [1, 1, 1]} : vector<1x8x32xbf16> to vector<1x8x8xbf16>
    %51 = tpu.concatenate %47, %48, %49, %50 in 0 : vector<1x8x8xbf16>, vector<1x8x8xbf16>, vector<1x8x8xbf16>, vector<1x8x8xbf16> -> vector<4x8x8xbf16>
    %52 = vector.extract_strided_slice %41 {offsets = [0, 0, 0], sizes = [1, 8, 8], strides = [1, 1, 1]} : vector<1x8x32xbf16> to vector<1x8x8xbf16>
    %53 = vector.extract_strided_slice %41 {offsets = [0, 0, 8], sizes = [1, 8, 8], strides = [1, 1, 1]} : vector<1x8x32xbf16> to vector<1x8x8xbf16>
    %54 = vector.extract_strided_slice %41 {offsets = [0, 0, 16], sizes = [1, 8, 8], strides = [1, 1, 1]} : vector<1x8x32xbf16> to vector<1x8x8xbf16>
    %55 = vector.extract_strided_slice %41 {offsets = [0, 0, 24], sizes = [1, 8, 8], strides = [1, 1, 1]} : vector<1x8x32xbf16> to vector<1x8x8xbf16>
    %56 = tpu.concatenate %52, %53, %54, %55 in 0 : vector<1x8x8xbf16>, vector<1x8x8xbf16>, vector<1x8x8xbf16>, vector<1x8x8xbf16> -> vector<4x8x8xbf16>
    "tpu.trace_start"() <{level = 10 : i32, message = "gqd,gkd->gqk"}> : () -> ()
    %cst_15 = arith.constant dense<0.000000e+00> : vector<4x8x8xf32>
    %57 = tpu.matmul %46, %51, %cst_15 {dimension_numbers = #tpu.dot_dimension_numbers<[2], [2], [1], [1], [0, 0, 0, 1, 1, 1], [0], [0]>} : vector<4x8x8xbf16>, vector<4x8x8xbf16>, vector<4x8x8xf32> -> vector<4x8x8xf32>
    "tpu.trace_stop"() : () -> ()
    %cst_16 = arith.constant dense<0xFF800000> : vector<4x8xf32>
    %58 = vector.multi_reduction <maximumf>, %57, %cst_16 [2] : vector<4x8x8xf32> to vector<4x8xf32>
    %59 = vector.shape_cast %58 : vector<4x8xf32> to vector<4x8x1xf32>
    %60 = vector.broadcast %59 : vector<4x8x1xf32> to vector<4x8x8xf32>
    %61 = arith.subf %57, %60 : vector<4x8x8xf32>
    %62 = math.exp %61 : vector<4x8x8xf32>
    %cst_17 = arith.constant dense<0.000000e+00> : vector<4x8xf32>
    %63 = vector.multi_reduction <add>, %62, %cst_17 [2] : vector<4x8x8xf32> to vector<4x8xf32>
    %64 = vector.shape_cast %63 : vector<4x8xf32> to vector<4x8x1xf32>
    %cst_18 = arith.constant 1.000000e+00 : f32
    %65 = vector.broadcast %cst_18 : f32 to vector<4x8x1xf32>
    %66 = arith.divf %65, %64 : vector<4x8x1xf32>
    %67 = vector.broadcast %66 : vector<4x8x1xf32> to vector<4x8x8xf32>
    %68 = arith.mulf %62, %67 : vector<4x8x8xf32>
    %69 = arith.truncf %68 : vector<4x8x8xf32> to vector<4x8x8xbf16>
    "tpu.trace_start"() <{level = 10 : i32, message = "gqk,gkd->gqd"}> : () -> ()
    %cst_19 = arith.constant dense<0.000000e+00> : vector<4x8x8xf32>
    %70 = tpu.matmul %69, %56, %cst_19 {dimension_numbers = #tpu.dot_dimension_numbers<[2], [1], [1], [2], [0, 0, 0, 1, 1, 2], [0], [0]>} : vector<4x8x8xbf16>, vector<4x8x8xbf16>, vector<4x8x8xf32> -> vector<4x8x8xf32>
    "tpu.trace_stop"() : () -> ()
    %71 = vector.shape_cast %68 : vector<4x8x8xf32> to vector<4x1x8x8xf32>
    %cst_20 = arith.constant dense<0.000000e+00> : vector<1x8x8xf32>
    %72 = vector.multi_reduction <add>, %71, %cst_20 [0] : vector<4x1x8x8xf32> to vector<1x8x8xf32>
    %cst_21 = arith.constant 2.500000e-01 : f32
    %73 = vector.broadcast %cst_21 : f32 to vector<1x8x8xf32>
    %74 = arith.mulf %72, %73 : vector<1x8x8xf32>
    %c0_22 = arith.constant 0 : index
    %c0_23 = arith.constant 0 : index
    %c0_24 = arith.constant 0 : index
    %75 = vector.load %arg15[%c0_22, %c0_23, %c0_24] : memref<1x8x8xf32, #tpu.memory_space<vmem>>, vector<1x8x8xf32>
    tpu.vector_store %arg15[%c0_22, %c0_23, %c0_24], %74 {strides = array<i32>} : memref<1x8x8xf32, #tpu.memory_space<vmem>>, vector<1x8x8xf32>,
    %c0_25 = arith.constant 0 : index
    %c0_26 = arith.constant 0 : index
    %76 = vector.load %arg6[%c0_25, %c0_26] : memref<32x32xbf16, #tpu.memory_space<vmem>>, vector<32x32xbf16>
    %c0_27 = arith.constant 0 : index
    %c0_28 = arith.constant 0 : index
    %77 = vector.load %arg7[%c0_27, %c0_28] : memref<1x32xf32, #tpu.memory_space<vmem>>, vector<1x32xf32>
    %78 = vector.extract_strided_slice %70 {offsets = [0, 0, 0], sizes = [1, 8, 8], strides = [1, 1, 1]} : vector<4x8x8xf32> to vector<1x8x8xf32>
    %79 = vector.shape_cast %78 : vector<1x8x8xf32> to vector<8x8xf32>
    %80 = arith.truncf %79 : vector<8x8xf32> to vector<8x8xbf16>
    %81 = vector.extract_strided_slice %76 {offsets = [0, 0], sizes = [8, 32], strides = [1, 1]} : vector<32x32xbf16> to vector<8x32xbf16>
    %cst_29 = arith.constant dense<0.000000e+00> : vector<8x32xf32>
    %82 = tpu.matmul %80, %81, %cst_29 {dimension_numbers = #tpu.dot_dimension_numbers<[1], [0], [0], [1], [0, 0, 1, 1], [], []>} : vector<8x8xbf16>, vector<8x32xbf16>, vector<8x32xf32> -> vector<8x32xf32>
    %83 = vector.broadcast %77 : vector<1x32xf32> to vector<8x32xf32>
    %84 = arith.addf %83, %82 : vector<8x32xf32>
    %85 = vector.extract_strided_slice %70 {offsets = [1, 0, 0], sizes = [1, 8, 8], strides = [1, 1, 1]} : vector<4x8x8xf32> to vector<1x8x8xf32>
    %86 = vector.shape_cast %85 : vector<1x8x8xf32> to vector<8x8xf32>
    %87 = arith.truncf %86 : vector<8x8xf32> to vector<8x8xbf16>
    %88 = vector.extract_strided_slice %76 {offsets = [8, 0], sizes = [8, 32], strides = [1, 1]} : vector<32x32xbf16> to vector<8x32xbf16>
    %cst_30 = arith.constant dense<0.000000e+00> : vector<8x32xf32>
    %89 = tpu.matmul %87, %88, %cst_30 {dimension_numbers = #tpu.dot_dimension_numbers<[1], [0], [0], [1], [0, 0, 1, 1], [], []>} : vector<8x8xbf16>, vector<8x32xbf16>, vector<8x32xf32> -> vector<8x32xf32>
    %90 = arith.addf %84, %89 : vector<8x32xf32>
    %91 = vector.extract_strided_slice %70 {offsets = [2, 0, 0], sizes = [1, 8, 8], strides = [1, 1, 1]} : vector<4x8x8xf32> to vector<1x8x8xf32>
    %92 = vector.shape_cast %91 : vector<1x8x8xf32> to vector<8x8xf32>
    %93 = arith.truncf %92 : vector<8x8xf32> to vector<8x8xbf16>
    %94 = vector.extract_strided_slice %76 {offsets = [16, 0], sizes = [8, 32], strides = [1, 1]} : vector<32x32xbf16> to vector<8x32xbf16>
    %cst_31 = arith.constant dense<0.000000e+00> : vector<8x32xf32>
    %95 = tpu.matmul %93, %94, %cst_31 {dimension_numbers = #tpu.dot_dimension_numbers<[1], [0], [0], [1], [0, 0, 1, 1], [], []>} : vector<8x8xbf16>, vector<8x32xbf16>, vector<8x32xf32> -> vector<8x32xf32>
    %96 = arith.addf %90, %95 : vector<8x32xf32>
    %97 = vector.extract_strided_slice %70 {offsets = [3, 0, 0], sizes = [1, 8, 8], strides = [1, 1, 1]} : vector<4x8x8xf32> to vector<1x8x8xf32>
    %98 = vector.shape_cast %97 : vector<1x8x8xf32> to vector<8x8xf32>
    %99 = arith.truncf %98 : vector<8x8xf32> to vector<8x8xbf16>
    %100 = vector.extract_strided_slice %76 {offsets = [24, 0], sizes = [8, 32], strides = [1, 1]} : vector<32x32xbf16> to vector<8x32xbf16>
    %cst_32 = arith.constant dense<0.000000e+00> : vector<8x32xf32>
    %101 = tpu.matmul %99, %100, %cst_32 {dimension_numbers = #tpu.dot_dimension_numbers<[1], [0], [0], [1], [0, 0, 1, 1], [], []>} : vector<8x8xbf16>, vector<8x32xbf16>, vector<8x32xf32> -> vector<8x32xf32>
    %102 = arith.addf %96, %101 : vector<8x32xf32>
    %103 = arith.addf %0, %102 : vector<8x32xf32>
    %c0_33 = arith.constant 0 : index
    %c0_34 = arith.constant 0 : index
    %104 = vector.load %arg8[%c0_33, %c0_34] : memref<1x32xf32, #tpu.memory_space<vmem>>, vector<1x32xf32>
    %c0_35 = arith.constant 0 : index
    %c0_36 = arith.constant 0 : index
    %105 = vector.load %arg9[%c0_35, %c0_36] : memref<1x32xf32, #tpu.memory_space<vmem>>, vector<1x32xf32>
    %cst_37 = arith.constant dense<0.000000e+00> : vector<8xf32>
    %106 = vector.multi_reduction <add>, %103, %cst_37 [1] : vector<8x32xf32> to vector<8xf32>
    %107 = vector.shape_cast %106 : vector<8xf32> to vector<8x1xf32>
    %cst_38 = arith.constant 3.200000e+01 : f32
    %108 = vector.broadcast %cst_38 : f32 to vector<8x1xf32>
    %109 = arith.divf %107, %108 : vector<8x1xf32>
    %110 = arith.mulf %103, %103 : vector<8x32xf32>
    %cst_39 = arith.constant dense<0.000000e+00> : vector<8xf32>
    %111 = vector.multi_reduction <add>, %110, %cst_39 [1] : vector<8x32xf32> to vector<8xf32>
    %112 = vector.shape_cast %111 : vector<8xf32> to vector<8x1xf32>
    %cst_40 = arith.constant 3.200000e+01 : f32
    %113 = vector.broadcast %cst_40 : f32 to vector<8x1xf32>
    %114 = arith.divf %112, %113 : vector<8x1xf32>
    %115 = arith.mulf %109, %109 : vector<8x1xf32>
    %116 = arith.subf %114, %115 : vector<8x1xf32>
    %cst_41 = arith.constant 0.000000e+00 : f32
    %117 = vector.broadcast %cst_41 : f32 to vector<8x1xf32>
    %118 = arith.maximumf %116, %117 : vector<8x1xf32>
    %119 = vector.broadcast %109 : vector<8x1xf32> to vector<8x32xf32>
    %120 = arith.subf %103, %119 : vector<8x32xf32>
    %cst_42 = arith.constant 9.99999974E-6 : f32
    %121 = vector.broadcast %cst_42 : f32 to vector<8x1xf32>
    %122 = arith.addf %118, %121 : vector<8x1xf32>
    %123 = math.rsqrt %122 : vector<8x1xf32>
    %124 = vector.broadcast %123 : vector<8x1xf32> to vector<8x32xf32>
    %125 = arith.mulf %120, %124 : vector<8x32xf32>
    %126 = vector.broadcast %104 : vector<1x32xf32> to vector<8x32xf32>
    %127 = arith.mulf %125, %126 : vector<8x32xf32>
    %128 = vector.broadcast %105 : vector<1x32xf32> to vector<8x32xf32>
    %129 = arith.addf %127, %128 : vector<8x32xf32>
    %130 = arith.truncf %129 : vector<8x32xf32> to vector<8x32xbf16>
    %c0_43 = arith.constant 0 : index
    %c0_44 = arith.constant 0 : index
    %131 = vector.load %arg10[%c0_43, %c0_44] : memref<32x128xbf16, #tpu.memory_space<vmem>>, vector<32x128xbf16>
    %cst_45 = arith.constant dense<0.000000e+00> : vector<8x128xf32>
    %132 = tpu.matmul %130, %131, %cst_45 {dimension_numbers = #tpu.dot_dimension_numbers<[1], [0], [0], [1], [0, 0, 1, 1], [], []>} : vector<8x32xbf16>, vector<32x128xbf16>, vector<8x128xf32> -> vector<8x128xf32>
    %c0_46 = arith.constant 0 : index
    %c0_47 = arith.constant 0 : index
    %133 = vector.load %arg11[%c0_46, %c0_47] : memref<1x128xf32, #tpu.memory_space<vmem>>, vector<1x128xf32>
    %134 = vector.broadcast %133 : vector<1x128xf32> to vector<8x128xf32>
    %135 = arith.addf %132, %134 : vector<8x128xf32>
    %cst_48 = arith.constant 5.000000e-01 : f32
    %136 = vector.broadcast %cst_48 : f32 to vector<8x128xf32>
    %137 = arith.mulf %136, %135 : vector<8x128xf32>
    %cst_49 = arith.constant 0.707106769 : f32
    %138 = vector.broadcast %cst_49 : f32 to vector<8x128xf32>
    %139 = arith.mulf %135, %138 : vector<8x128xf32>
    %cst_50 = arith.constant 0.000000e+00 : f32
    %140 = vector.broadcast %cst_50 : f32 to vector<8x128xf32>
    %141 = arith.cmpf oge, %139, %140 : vector<8x128xf32>
    %cst_51 = arith.constant 1.000000e+00 : f32
    %cst_52 = arith.constant -1.000000e+00 : f32
    %142 = vector.broadcast %cst_51 : f32 to vector<8x128xf32>
    %143 = vector.broadcast %cst_52 : f32 to vector<8x128xf32>
    %144 = arith.select %141, %142, %143 : vector<8x128xi1>, vector<8x128xf32>
    %145 = math.absf %139 : vector<8x128xf32>
    %cst_53 = arith.constant 0.327591091 : f32
    %146 = vector.broadcast %cst_53 : f32 to vector<8x128xf32>
    %147 = arith.mulf %146, %145 : vector<8x128xf32>
    %cst_54 = arith.constant 1.000000e+00 : f32
    %148 = vector.broadcast %cst_54 : f32 to vector<8x128xf32>
    %149 = arith.addf %148, %147 : vector<8x128xf32>
    %cst_55 = arith.constant 1.000000e+00 : f32
    %150 = vector.broadcast %cst_55 : f32 to vector<8x128xf32>
    %151 = arith.divf %150, %149 : vector<8x128xf32>
    %cst_56 = arith.constant 1.06140542 : f32
    %152 = vector.broadcast %cst_56 : f32 to vector<8x128xf32>
    %153 = arith.mulf %152, %151 : vector<8x128xf32>
    %cst_57 = arith.constant -1.45315206 : f32
    %154 = vector.broadcast %cst_57 : f32 to vector<8x128xf32>
    %155 = arith.addf %153, %154 : vector<8x128xf32>
    %156 = arith.mulf %155, %151 : vector<8x128xf32>
    %cst_58 = arith.constant 1.42141378 : f32
    %157 = vector.broadcast %cst_58 : f32 to vector<8x128xf32>
    %158 = arith.addf %156, %157 : vector<8x128xf32>
    %159 = arith.mulf %158, %151 : vector<8x128xf32>
    %cst_59 = arith.constant -0.284496725 : f32
    %160 = vector.broadcast %cst_59 : f32 to vector<8x128xf32>
    %161 = arith.addf %159, %160 : vector<8x128xf32>
    %162 = arith.mulf %161, %151 : vector<8x128xf32>
    %cst_60 = arith.constant 0.254829586 : f32
    %163 = vector.broadcast %cst_60 : f32 to vector<8x128xf32>
    %164 = arith.addf %162, %163 : vector<8x128xf32>
    %165 = arith.mulf %164, %151 : vector<8x128xf32>
    %cst_61 = arith.constant 0.000000e+00 : f32
    %166 = vector.broadcast %cst_61 : f32 to vector<8x128xf32>
    %167 = arith.subf %166, %145 : vector<8x128xf32>
    %168 = arith.mulf %167, %145 : vector<8x128xf32>
    %169 = math.exp %168 : vector<8x128xf32>
    %170 = arith.mulf %165, %169 : vector<8x128xf32>
    %cst_62 = arith.constant 1.000000e+00 : f32
    %171 = vector.broadcast %cst_62 : f32 to vector<8x128xf32>
    %172 = arith.subf %171, %170 : vector<8x128xf32>
    %173 = arith.mulf %144, %172 : vector<8x128xf32>
    %cst_63 = arith.constant 1.000000e+00 : f32
    %174 = vector.broadcast %cst_63 : f32 to vector<8x128xf32>
    %175 = arith.addf %174, %173 : vector<8x128xf32>
    %176 = arith.mulf %137, %175 : vector<8x128xf32>
    %177 = arith.truncf %176 : vector<8x128xf32> to vector<8x128xbf16>
    %c0_64 = arith.constant 0 : index
    %c0_65 = arith.constant 0 : index
    %178 = vector.load %arg12[%c0_64, %c0_65] : memref<128x32xbf16, #tpu.memory_space<vmem>>, vector<128x32xbf16>
    %cst_66 = arith.constant dense<0.000000e+00> : vector<8x32xf32>
    %179 = tpu.matmul %177, %178, %cst_66 {dimension_numbers = #tpu.dot_dimension_numbers<[1], [0], [0], [1], [0, 0, 1, 1], [], []>} : vector<8x128xbf16>, vector<128x32xbf16>, vector<8x32xf32> -> vector<8x32xf32>
    %c0_67 = arith.constant 0 : index
    %c0_68 = arith.constant 0 : index
    %180 = vector.load %arg13[%c0_67, %c0_68] : memref<1x32xf32, #tpu.memory_space<vmem>>, vector<1x32xf32>
    %181 = vector.broadcast %180 : vector<1x32xf32> to vector<8x32xf32>
    %182 = arith.addf %179, %181 : vector<8x32xf32>
    %183 = arith.addf %103, %182 : vector<8x32xf32>
    %c0_69 = arith.constant 0 : index
    %c0_70 = arith.constant 0 : index
    %184 = vector.load %arg14[%c0_69, %c0_70] : memref<8x32xf32, #tpu.memory_space<vmem>>, vector<8x32xf32>
    tpu.vector_store %arg14[%c0_69, %c0_70], %183 {strides = array<i32>} : memref<8x32xf32, #tpu.memory_space<vmem>>, vector<8x32xf32>,
    return
  }
  func.func @transform_0(%arg0: i32) -> (i32, i32) {
    %c0_i32 = arith.constant 0 : i32
    %c0_i32_0 = arith.constant 0 : i32
    return %arg0, %c0_i32 : i32, i32
  }
  func.func @transform_1(%arg0: i32) -> (i32, i32) {
    %c0_i32 = arith.constant 0 : i32
    %c0_i32_0 = arith.constant 0 : i32
    %c0_i32_1 = arith.constant 0 : i32
    return %c0_i32, %c0_i32_0 : i32, i32
  }
  func.func @transform_2(%arg0: i32) -> (i32, i32) {
    %c0_i32 = arith.constant 0 : i32
    %c0_i32_0 = arith.constant 0 : i32
    %c0_i32_1 = arith.constant 0 : i32
    return %c0_i32, %c0_i32_0 : i32, i32
  }
  func.func @transform_3(%arg0: i32) -> (i32, i32) {
    %c0_i32 = arith.constant 0 : i32
    %c0_i32_0 = arith.constant 0 : i32
    %c0_i32_1 = arith.constant 0 : i32
    return %c0_i32, %c0_i32_0 : i32, i32
  }
  func.func @transform_4(%arg0: i32) -> (i32, i32) {
    %c0_i32 = arith.constant 0 : i32
    %c0_i32_0 = arith.constant 0 : i32
    %c0_i32_1 = arith.constant 0 : i32
    return %c0_i32, %c0_i32_0 : i32, i32
  }
  func.func @transform_5(%arg0: i32) -> (i32, i32) {
    %c0_i32 = arith.constant 0 : i32
    %c0_i32_0 = arith.constant 0 : i32
    %c0_i32_1 = arith.constant 0 : i32
    return %c0_i32, %c0_i32_0 : i32, i32
  }
  func.func @transform_6(%arg0: i32) -> (i32, i32) {
    %c0_i32 = arith.constant 0 : i32
    %c0_i32_0 = arith.constant 0 : i32
    %c0_i32_1 = arith.constant 0 : i32
    return %c0_i32, %c0_i32_0 : i32, i32
  }
  func.func @transform_7(%arg0: i32) -> (i32, i32) {
    %c0_i32 = arith.constant 0 : i32
    %c0_i32_0 = arith.constant 0 : i32
    %c0_i32_1 = arith.constant 0 : i32
    return %c0_i32, %c0_i32_0 : i32, i32
  }
  func.func @transform_8(%arg0: i32) -> (i32, i32) {
    %c0_i32 = arith.constant 0 : i32
    %c0_i32_0 = arith.constant 0 : i32
    %c0_i32_1 = arith.constant 0 : i32
    return %c0_i32, %c0_i32_0 : i32, i32
  }
  func.func @transform_9(%arg0: i32) -> (i32, i32) {
    %c0_i32 = arith.constant 0 : i32
    %c0_i32_0 = arith.constant 0 : i32
    %c0_i32_1 = arith.constant 0 : i32
    return %c0_i32, %c0_i32_0 : i32, i32
  }
  func.func @transform_10(%arg0: i32) -> (i32, i32) {
    %c0_i32 = arith.constant 0 : i32
    %c0_i32_0 = arith.constant 0 : i32
    %c0_i32_1 = arith.constant 0 : i32
    return %c0_i32, %c0_i32_0 : i32, i32
  }
  func.func @transform_11(%arg0: i32) -> (i32, i32) {
    %c0_i32 = arith.constant 0 : i32
    %c0_i32_0 = arith.constant 0 : i32
    %c0_i32_1 = arith.constant 0 : i32
    return %c0_i32, %c0_i32_0 : i32, i32
  }
  func.func @transform_12(%arg0: i32) -> (i32, i32) {
    %c0_i32 = arith.constant 0 : i32
    %c0_i32_0 = arith.constant 0 : i32
    %c0_i32_1 = arith.constant 0 : i32
    return %c0_i32, %c0_i32_0 : i32, i32
  }
  func.func @transform_13(%arg0: i32) -> (i32, i32) {
    %c0_i32 = arith.constant 0 : i32
    %c0_i32_0 = arith.constant 0 : i32
    return %arg0, %c0_i32 : i32, i32
  }
  func.func @transform_14(%arg0: i32) -> (i32, i32, i32) {
    %c0_i32 = arith.constant 0 : i32
    %c0_i32_0 = arith.constant 0 : i32
    %c0_i32_1 = arith.constant 0 : i32
    return %arg0, %c0_i32, %c0_i32_0 : i32, i32, i32
  }
}

</mosaic_0001>

<bundles_post_ra>
// kernel: tpu_custom_call.1
= control target key start
LH: loop header
LB: loop body
LE: loop exit
PB: predicated region body
PF: predicated region fallthrough
CT: control target
= control target key end

     0   :  { %s1892_s0 = inlined_call_operand.vmem [shape: f32[16,32], index: 0, kind: input, shape index: {}]   ;;  %s1893_s1 = inlined_call_operand.vmem [shape: f32[1,32], index: 1, kind: input, shape index: {}]   ;;  %s1894_s2 = inlined_call_operand.vmem [shape: f32[1,32], index: 2, kind: input, shape index: {}]   ;;  %s1895_s3 = inlined_call_operand.vmem [shape: bf16[32,96], index: 3, kind: input, shape index: {}]   ;;  %s1896_s4 = inlined_call_operand.vmem [shape: f32[1,96], index: 4, kind: input, shape index: {}]   ;;  %s1897_s5 = inlined_call_operand.vmem [shape: bf16[32,32], index: 5, kind: input, shape index: {}]   ;;  %s1898_s6 = inlined_call_operand.vmem [shape: f32[1,32], index: 6, kind: input, shape index: {}]   ;;  %s1899_s7 = inlined_call_operand.vmem [shape: f32[1,32], index: 7, kind: input, shape index: {}]   ;;  %s1900_s8 = inlined_call_operand.vmem [shape: f32[1,32], index: 8, kind: input, shape index: {}]   ;;  %s1901_s9 = inlined_call_operand.vmem [shape: bf16[32,128], index: 9, kind: input, shape index: {}]   ;;  %s1902_s10 = inlined_call_operand.vmem [shape: f32[1,128], index: 10, kind: input, shape index: {}]   ;;  %s1903_s11 = inlined_call_operand.vmem [shape: bf16[128,32], index: 11, kind: input, shape index: {}]   ;;  %s1904_s12 = inlined_call_operand.vmem [shape: f32[1,32], index: 12, kind: input, shape index: {}]   ;;  %s1905_s13 = inlined_call_operand.hbm [shape: f32[16,32], index: 13, kind: output, shape index: {0}]   ;;  %s1906_s14 = inlined_call_operand.hbm [shape: f32[2,8,8], index: 14, kind: output, shape index: {1}]  }
   0x1   :  { %1908 = sst [smem:[#allocation8_spill]] %s1892_s0 }
   0x2   :  { %1909 = sst [smem:[#allocation9_spill]] %s1893_s1 }
   0x3   :  { %1910 = sst [smem:[#allocation10_spill]] %s1894_s2 }
   0x4   :  { %1911 = sst [smem:[#allocation11_spill]] %s1895_s3 }
   0x5   :  { %1912 = sst [smem:[#allocation12_spill]] %s1896_s4 }
   0x6   :  { %1913 = sst [smem:[#allocation13_spill]] %s1897_s5 }
   0x7   :  { %1914 = sst [smem:[#allocation14_spill]] %s1898_s6 }
   0x8   :  { %1915 = sst [smem:[#allocation15_spill]] %s1899_s7 }
   0x9   :  { %20 = vsyncpa [#allocation3], 0 }
   0xa   :  { %22 = vsyncpa [#allocation3 + $0x1], 0 }
   0xb   :  { %23 = vsyncpa [#allocation5], 0 }
   0xc   :  { %25 = vsyncpa [#allocation5 + $0x1], 0  ;;  %s1621_s29 = smov 0   ;;  %s1623_s30 = smov 0  }
   0xd   :  { %s1625_s15 = smov 0   ;;  %s1627_s16 = smov 0  }
   0xe LB: > { %s1642_s17 = sadd.s32 4294967295, %s1537_s16   ;;  %s1271_s18 = sadd.s32 4294967294, %s1537_s16   ;;  %s1537_s16 = sphi %s1627_s16, %s1930_s16   ;;  %s1533_s15 = sphi %s1625_s15, %s1929_s15   ;;  %s1529_s30 = sphi %s1623_s30, %s1928_s30   ;;  %s1525_s29 = sphi %s1621_s29, %s1927_s29  }
   0xf   : > { %s1646_s19 = sadd.s32 1, %s1537_s16   ;;  %s316_s20 = sadd.s32 1, %s1533_s15 }
  0x10   : > { %s313_s21 = ssub.s32 %s1537_s16, %s1646_s19  ;;  %p326_p0 = scmp.ne.s32.totalorder %s1533_s15, %s1529_s30 }
  0x11   : > { %p314_p1 = scmp.eq.s32.totalorder %s313_s21, 0  ;;  %p327_p2 = scmp.eq.s32.totalorder %s1642_s17, 1 }
  0x12   : > { %p332_p3 = scmp.ne.s32.totalorder %s1529_s30, %s1525_s29  ;;  %p333_p4 = scmp.eq.s32.totalorder %s1271_s18, 1 }
  0x13   : > { %s1657_s22 = scalar_select %p314_p1, %s1533_s15, %s316_s20  }
  0x14   : > { %p1659_p5 = por %p327_p2, %p326_p0  ;;  %p1663_p6 = por %p333_p4, %p332_p3 }
  0x15   : > { %p1274_p7 = scmp.ge.s32.totalorder %s1537_s16, 1  ;;  %p420_p8 = scmp.lt.s32.totalorder %s1537_s16, 3 }
  0x17   : > { %p421_p9 = pnand %p1274_p7, %p420_p8 }
  0x18   : > { %p470_p10 = scmp.lt.s32.totalorder (!%p421_p9), %s1642_s17, 1  ;;  %s1918_s0 = sld [smem:[#allocation8_spill]] (!%p421_p9) }
  0x19   : > { %424 = sbr.rel (%p421_p9) target bundleno = 1720 (0x6b8), region = 72  ;;  %s1919_s3 = sld [smem:[#allocation11_spill]] (!%p421_p9) }
  0x1a   : > { %s1920_s1 = sld [smem:[#allocation9_spill]] (!%p421_p9)  ;;  %s1541_s27 = smov (!%p421_p9), 120  }
  0x1b   : > { %s1921_s2 = sld [smem:[#allocation10_spill]] (!%p421_p9)  ;;  %s1542_s28 = smov (!%p421_p9), 112  }
  0x1c   : > { %s1922_s4 = sld [smem:[#allocation12_spill]] (!%p421_p9)  ;;  %s1544_s20 = smov (!%p421_p9), 64  }
  0x1d   : > { %s1752_s21 = sand.u32 (!%p421_p9), 1, %s1529_s30   ;;  %s1923_s5 = sld [smem:[#allocation13_spill]] (!%p421_p9) }
  0x1e   : > { %s471_s25 = scalar_select %p470_p10, %s1642_s17, 1  ;;  %vm478_vm0 = vcmask 261120   ;;  %v1539_v4 = vmov 32.0   ;;  %vm568_vm5 = vcmask 64512   ;;  %vm766_vm6 = vcmask 1043456  }
  0x1f   : > { %1417 = vrcp.f32 %v1539_v4  ;;  %v1347_v11 = vld [vmem:[%s1919_s3 + $0x8] sm:$0xff]  ;;  %v1346_v13 = vld [vmem:[%s1919_s3] sm:$0xff]  ;;  %s1924_s6 = sld [smem:[#allocation14_spill]] }
  0x20   : > { %s1277_s26 = sshll.u32 %s471_s25, 3  ;;  %549 = vmatpush.bf16.msra.mxu0 %v1347_v11  ;;  %v1409_v28 = vld [vmem:[%s1920_s1] ss:$0 sm:$0xff]  ;;  %s1907_s25 = sshll.u32 %s1752_s21, 3 }
  0x21   : > { %s473_s18 = scalar_lea.vmem %s1918_s0, %s1277_s26  ;;  %v1410_v31 = vld [vmem:[%s1921_s2] ss:$0 sm:$0xff]  ;;  %s1540_s26 = smov 104  }
  0x22   : > { %v1674_v0 = vld [vmem:[%s473_s18] sm:$0xff]  ;;  %s1543_s18 = smov 96   ;;  %s1925_s7 = sld [smem:[#allocation15_spill]] }
  0x23   : > { %v479_v1 = vsel %vm478_vm0, %v1674_v0, 0.0  ;;  %v490_v2 = vmul.f32 %v1674_v0, %v1674_v0  ;;  %v1411_v35 = vld [vmem:[%s1922_s4] ss:$0 sm:$0xff]  ;;  %s1342_s2 = sshll.u32 %s1642_s17, 3  ;;  %s1463_s17 = scalar_lea.hbm %s1906_s14, 16 }
  0x24   : > { %480 = vadd.xlane.f32.xlu0 %v479_v1  ;;  %550 = vmatpush.bf16.msra.mxu0 %v1346_v13  ;;  %s1174_s0 = scalar_lea.hbm %s1906_s14, %s1342_s2 }
  0x25   : > { %v491_v3 = vsel %vm478_vm0, %v490_v2, 0.0  ;;  %v1418_v5 = vpop.eup %1417 }
  0x26   : > { %v483_v6 = vmul.f32 32.0, %v1418_v5  ;;  %vm487_vm1 = vweird.f32 %v1418_v5 }
  0x28   : > { %v484_v7 = vsub.f32 1.0, %v483_v6 }
  0x2a   : > { %v485_v8 = vmul.f32 %v1418_v5, %v484_v7 }
  0x2c   : > { %492 = vadd.xlane.f32.xlu0 %v491_v3  ;;  %v486_v9 = vadd.f32 %v1418_v5, %v485_v8 }
  0x2e   : > { %v1684_v12 = vsel %vm487_vm1, %v1418_v5, %v486_v9 }
  0x97   : > { %v481_v10 = vpop.xlane.xlu0 %480 }
  0x98   : > { %v489_v14 = vmul.f32 %v1684_v12, %v481_v10 }
  0x9a   : > { %v495_v16 = vmul.f32 %v489_v14, %v489_v14  ;;  %v498_v27 = vsub.f32 %v1674_v0, %v489_v14 }
  0x9f   : > { %v493_v15 = vpop.xlane.xlu0 %492 }
  0xa0   : > { %v494_v17 = vmul.f32 %v493_v15, %v1684_v12 }
  0xa2   : > { %v496_v18 = vsub.f32 %v494_v17, %v495_v16 }
  0xa4   : > { %v497_v19 = vmax.f32 %v496_v18, 0.0 }
  0xa6   : > { %v499_v20 = vadd.f32 1e-05, %v497_v19 }
  0xa8   : > { %1419 = vrsqrt.f32 %v499_v20  ;;  %vm506_vm3 = vweird.f32 %v499_v20 }
  0xae   : > { %v1420_v21 = vpop.eup %1419 }
  0xaf   : > { %v501_v22 = vmul.f32 %v1420_v21, %v499_v20  ;;  %vm507_vm2 = vweird.f32 %v1420_v21 }
  0xb0   : > { %vm508_vm4 = vmor %vm506_vm3, %vm507_vm2 }
  0xb1   : > { %v502_v23 = vmul.f32 %v1420_v21, %v501_v22 }
  0xb3   : > { %v503_v24 = vmul.f32 0.5, %v502_v23 }
  0xb5   : > { %v504_v25 = vsub.f32 1.5, %v503_v24 }
  0xb7   : > { %v505_v26 = vmul.f32 %v1420_v21, %v504_v25 }
  0xb9   : > { %v509_v29 = vsel %vm508_vm4, %v1420_v21, %v505_v26 }
  0xba   : > { %v510_v30 = vmul.f32 %v509_v29, %v498_v27 }
  0xbc   : > { %v514_v32 = vmul.f32 %v1409_v28, %v510_v30 }
  0xbe   : > { %v518_v33 = vadd.f32 %v1410_v31, %v514_v32 }
  0xc0   : > { %v519_v34 = vpack.c.bf16 %v518_v33, %v518_v33 }
  0xc2   : > { %1286 = vmatmul.msk.bf16.vlgmr.msra.gmra.mxu0 %vm478_vm0, %v519_v34 }
 0x13f   : > { %v552_v36 = vpop.f32.mrf.mxu0 }
 0x140   : > { %v553_v37 = vadd.f32 %v1411_v35, %v552_v36 }
 0x142   : > { %v556_v38 = vpack.c.bf16 %v553_v37, %v553_v37 }
 0x144   : > { %562 = vrot.lane.b32.xlu2 %v556_v38, %s1540_s26  ;;  %558 = vrot.lane.b32.xlu1 %v556_v38, %s1541_s27  ;;  %v564_v40 = vunpack.c.l.b16 %v556_v38  ;;  %s1760_s26 = scalar_lea.vmem [#allocation4], %s1907_s25  ;;  %s1178_s25 = sshll.u32 %s1174_s0, 4  ;;  %s1179_s25 = int_to_ptr.hbm [resolvable:$true] %s1178_s25 }
 0x145   : > { %s1176_s1 = sshll.u32 %s1760_s26, 4  ;;  %s1177_s1 = int_to_ptr.vmem [resolvable:$true] %s1176_s1 }
 0x146   : > { %v1702_v41 = vpack.c.b16 %v564_v40, %v564_v40 }
 0x147   : > { %v554_v39 = vpop.f32.mrf.mxu0 }
 0x14c   : > { %560 = vrot.lane.b32.xlu1 %v556_v38, %s1542_s28  ;;  %s1150_s28 = scalar_lea.sflag [#allocation5], %s1752_s21 }
 0x154   : > { %566 = vrot.lane.b32.xlu1 %v1702_v41, %s1543_s18 }
 0x19e   : > { %v563_v45 = vpop.permute.xlu2 %562 }
 0x19f   : > { %v634_v46 = vunpack.c.l.b16 %v563_v45 }
 0x1a1   : > { %v1705_v49 = vpack.c.b16 %v634_v46, %v634_v46 }
 0x1b6   : > { %v559_v42 = vpop.permute.xlu1 %558 }
 0x1b7   : > { %v588_v43 = vunpack.c.l.b16 %v559_v42 }
 0x1b9   : > { %v589_v44 = vpack.c.b16 %v588_v43, %v588_v43 }
 0x1bb   : > { %590 = vrot.lane.b32.xlu2 %v589_v44, %s1543_s18 }
 0x1be   : > { %v561_v47 = vpop.permute.xlu1 %560 }
 0x1bf   : > { %v611_v48 = vunpack.c.l.b16 %v561_v47 }
 0x1c1   : > { %v1707_v50 = vpack.c.b16 %v611_v48, %v611_v48 }
 0x1c3   : > { %636 = vrot.lane.b32.xlu2 %v1705_v49, %s1543_s18  ;;  %613 = vrot.lane.b32.xlu0 %v1707_v50, %s1543_s18  ;;  %s1457_s18 = sshra.s32 %s1179_s25, 4  ;;  %s1458_s18 = int_to_ptr.hbm [resolvable:$true] %s1457_s18 }
 0x1c4   : > { %s1459_s3 = scalar_lea.hbm %s1458_s18, 8  ;;  %p1464_p0 = scmp.lt.s32.totalorder %s1458_s18, %s1906_s14 }
 0x1c5   : > { %p1460_p11 = scmp.ne.s32.totalorder %s1458_s18, %s1459_s3  ;;  %p1465_p1 = scmp.lt.s32.totalorder %s1463_s17, %s1459_s3 }
 0x1c6   : > { %v567_v51 = vpop.permute.xlu1 %566 }
 0x1c7   : > { %v573_v52 = vsel %vm568_vm5, %v567_v51, 0  ;;  %p1461_p12 = pnand %p1460_p11, %p1659_p5  ;;  %p1466_p2 = por %p1465_p1, %p1464_p0 }
 0x1c8   : > { %582 = vmatpush.bf16.xpose.msra.mxu1 %v573_v52 }
 0x1c9   : > { %p1462_p13 = pneg %p1461_p12 }
 0x1cb   : > { %p1467_p3 = pnand %p1466_p2, %p1462_p13 }
 0x1cf   : > { %1287 = vmatmul.msk.bf16.vlgmr.msra.gmra.mxu1 %vm568_vm5, %v556_v38 }
 0x215   : > { %v591_v53 = vpop.permute.xlu2 %590 }
 0x216   : > { %v596_v54 = vsel %vm568_vm5, %v591_v53, 0 }
 0x217   : > { %605 = vmatpush.bf16.xpose.msra.mxu3 %v596_v54 }
 0x21d   : > { %v637_v55 = vpop.permute.xlu2 %636 }
 0x21e   : > { %1288 = vmatmul.msk.bf16.vlgmr.msra.gmra.mxu3 %vm568_vm5, %v559_v42  ;;  %v642_v56 = vsel %vm568_vm5, %v637_v55, 0 }
 0x21f   : > { %651 = vmatpush.bf16.xpose.msrb.mxu0 %v642_v56 }
 0x226   : > { %1290 = vmatmul.msk.bf16.vlgmr.msrb.gmra.mxu0 %vm568_vm5, %v563_v45 }
 0x235   : > { %v614_v57 = vpop.permute.xlu0 %613 }
 0x236   : > { %v619_v58 = vsel %vm568_vm5, %v614_v57, 0 }
 0x237   : > { %628 = vmatpush.bf16.xpose.msrb.mxu3 %v619_v58 }
 0x23e   : > { %1289 = vmatmul.msk.bf16.vlgmr.msrb.gmra.mxu3 %vm568_vm5, %v561_v47 }
 0x24c   : > { %v584_v59 = vpop.f32.mrf.mxu1 }
 0x24d   : > { %v657_v60 = vsel %vm568_vm5, %v584_v59, -inf }
 0x24e   : > { %658 = vmax.xlane.f32.xlu0 %v657_v60 }
 0x254   : > { %v586_v61 = vpop.f32.mrf.mxu1 }
 0x2a1   : > { %v607_v62 = vpop.f32.mrf.mxu3 }
 0x2a2   : > { %v660_v63 = vsel %vm568_vm5, %v607_v62, -inf }
 0x2a3   : > { %v653_v1 = vpop.f32.mrf.mxu0  ;;  %661 = vmax.xlane.f32.xlu1 %v660_v63 }
 0x2a4   : > { %v666_v2 = vsel %vm568_vm5, %v653_v1, -inf }
 0x2a5   : > { %667 = vmax.xlane.f32.xlu2 %v666_v2 }
 0x2a9   : > { %v609_v3 = vpop.f32.mrf.mxu3 }
 0x2ab   : > { %v655_v4 = vpop.f32.mrf.mxu0 }
 0x2c1   : > { %v630_v5 = vpop.f32.mrf.mxu3  ;;  %v659_v6 = vpop.xlane.xlu0 %658 }
 0x2c2   : > { %v669_v7 = vsub.f32 %v584_v59, %v659_v6  ;;  %v663_v8 = vsel %vm568_vm5, %v630_v5, -inf }
 0x2c3   : > { %664 = vmax.xlane.f32.xlu2 %v663_v8 }
 0x2c4   : > { %v673_v9 = vmul.f32 1.442695, %v669_v7 }
 0x2c6   : > { %1421 = vpow2.f32 %v673_v9 }
 0x2c9   : > { %v632_v10 = vpop.f32.mrf.mxu3 }
 0x2cc   : > { %v1723_v11 = vpop.eup %1421 }
 0x2cd   : > { %v681_v13 = vsel %vm568_vm5, %v1723_v11, 0.0 }
 0x2ce   : > { %682 = vadd.xlane.f32.xlu1 %v681_v13 }
 0x2db   : > { %783 = vrot.lane.b32.xlu2 %v589_v44, %s1544_s20 }
 0x316   : > { %v662_v14 = vpop.xlane.xlu1 %661 }
 0x317   : > { %v670_v15 = vsub.f32 %v607_v62, %v662_v14 }
 0x318   : > { %v668_v16 = vpop.xlane.xlu2 %667 }
 0x319   : > { %v675_v17 = vmul.f32 1.442695, %v670_v15  ;;  %v672_v18 = vsub.f32 %v653_v1, %v668_v16 }
 0x31b   : > { %1423 = vpow2.f32 %v675_v17  ;;  %v679_v19 = vmul.f32 1.442695, %v672_v18 }
 0x31d   : > { %1425 = vpow2.f32 %v679_v19 }
 0x321   : > { %v1424_v20 = vpop.eup %1423 }
 0x322   : > { %v684_v21 = vsel %vm568_vm5, %v1424_v20, 0.0 }
 0x323   : > { %v1728_v22 = vpop.eup %1425  ;;  %685 = vadd.xlane.f32.xlu1 %v684_v21 }
 0x324   : > { %v690_v23 = vsel %vm568_vm5, %v1728_v22, 0.0 }
 0x325   : > { %691 = vadd.xlane.f32.xlu0 %v690_v23 }
 0x336   : > { %v665_v24 = vpop.xlane.xlu2 %664 }
 0x337   : > { %v671_v25 = vsub.f32 %v630_v5, %v665_v24 }
 0x339   : > { %v677_v26 = vmul.f32 1.442695, %v671_v25  ;;  %761 = vrot.lane.b32.xlu0 %v1702_v41, %s1544_s20 }
 0x33b   : > { %1427 = vpow2.f32 %v677_v26 }
 0x33c   : > { %804 = vrot.lane.b32.xlu1 %v1707_v50, %s1544_s20 }
 0x33e   : > { %v784_v27 = vpop.permute.xlu2 %783 }
 0x33f   : > { %v789_v28 = vsel %vm766_vm6, %v784_v27, 0 }
 0x340   : > { %798 = vmatpush.bf16.msra.mxu2 %v789_v28 }
 0x341   : > { %v1735_v29 = vpop.eup %1427  ;;  %v683_v31 = vpop.xlane.xlu1 %682 }
 0x342   : > { %v687_v30 = vsel %vm568_vm5, %v1735_v29, 0.0  ;;  %1429 = vrcp.f32 %v683_v31  ;;  %vm698_vm8 = vweird.f32 %v683_v31  ;;  %v704_v42 = vand.u32 2147483648, %v683_v31 }
 0x343   : > { %688 = vadd.xlane.f32.xlu2 %v687_v30  ;;  %v702_v44 = vand.u32 2147483647, %v683_v31 }
 0x344   : > { %v705_v50 = vor.u32 1.1754944e-38, %v704_v42 }
 0x345   : > { %vm703_vm13 = vcmp.eq.f32.partialorder %v702_v44, 8.507059e+37 }
 0x348   : > { %v1430_v32 = vpop.eup %1429 }
 0x349   : > { %v694_v33 = vmul.f32 %v1430_v32, %v683_v31  ;;  %vm699_vm7 = vweird.f32 %v1430_v32 }
 0x34a   : > { %vm700_vm10 = vmor %vm698_vm8, %vm699_vm7 }
 0x34b   : > { %v695_v35 = vsub.f32 1.0, %v694_v33 }
 0x34d   : > { %v696_v36 = vmul.f32 %v1430_v32, %v695_v35 }
 0x34f   : > { %v697_v40 = vadd.f32 %v1430_v32, %v696_v36 }
 0x351   : > { %v701_v47 = vsel %vm700_vm10, %v1430_v32, %v697_v40 }
 0x352   : > { %v706_v53 = vsel %vm703_vm13, %v705_v50, %v701_v47 }
 0x353   : > { %v753_v57 = vmul.f32 %v1723_v11, %v706_v53 }
 0x355   : > { %v757_v63 = vpack.c.bf16 %v753_v57, %v753_v57  ;;  %v846_v26 = vsel %vm568_vm5, %v753_v57, 0.0 }
 0x35b   : > { %825 = vrot.lane.b32.xlu2 %v1705_v49, %s1544_s20 }
 0x396   : > { %v686_v34 = vpop.xlane.xlu1 %685 }
 0x397   : > { %1431 = vrcp.f32 %v686_v34  ;;  %v719_v43 = vand.u32 2147483648, %v686_v34  ;;  %v717_v46 = vand.u32 2147483647, %v686_v34  ;;  %vm713_vm11 = vweird.f32 %v686_v34 }
 0x398   : > { %v692_v37 = vpop.xlane.xlu0 %691 }
 0x399   : > { %1433 = vrcp.f32 %v692_v37  ;;  %v720_v51 = vor.u32 1.1754944e-38, %v719_v43  ;;  %vm718_vm14 = vcmp.eq.f32.partialorder %v717_v46, 8.507059e+37  ;;  %v749_v4 = vand.u32 2147483648, %v692_v37 }
 0x39a   : > { %vm743_vm1 = vweird.f32 %v692_v37  ;;  %v747_v5 = vand.u32 2147483647, %v692_v37 }
 0x39b   : > { %v750_v8 = vor.u32 1.1754944e-38, %v749_v4 }
 0x39c   : > { %vm748_vm3 = vcmp.eq.f32.partialorder %v747_v5, 8.507059e+37 }
 0x39d   : > { %v1432_v38 = vpop.eup %1431 }
 0x39e   : > { %v709_v39 = vmul.f32 %v1432_v38, %v686_v34  ;;  %vm714_vm9 = vweird.f32 %v1432_v38 }
 0x39f   : > { %v1434_v49 = vpop.eup %1433  ;;  %vm715_vm12 = vmor %vm713_vm11, %vm714_vm9 }
 0x3a0   : > { %v710_v41 = vsub.f32 1.0, %v709_v39  ;;  %v739_v55 = vmul.f32 %v1434_v49, %v692_v37  ;;  %vm744_vm15 = vweird.f32 %v1434_v49  ;;  %v856_v37 = vld [vmem:[%s1923_s5 + $0x4] sm:$0xf]  ;;  %v858_v39 = vld [vmem:[%s1923_s5 + $0xc] sm:$0xf] }
 0x3a1   : > { %vm745_vm2 = vmor %vm743_vm1, %vm744_vm15  ;;  %v931_v40 = vsel %vm766_vm6, %v858_v39, 0 }
 0x3a2   : > { %v711_v45 = vmul.f32 %v1432_v38, %v710_v41  ;;  %v740_v60 = vsub.f32 1.0, %v739_v55  ;;  %v857_v41 = vld [vmem:[%s1923_s5 + $0x8] sm:$0xf] }
 0x3a3   : > { %v910_v42 = vsel %vm766_vm6, %v857_v41, 0 }
 0x3a4   : > { %v712_v48 = vadd.f32 %v1432_v38, %v711_v45  ;;  %v741_v2 = vmul.f32 %v1434_v49, %v740_v60 }
 0x3a6   : > { %v716_v52 = vsel %vm715_vm12, %v1432_v38, %v712_v48  ;;  %v742_v3 = vadd.f32 %v1434_v49, %v741_v2  ;;  %v889_v38 = vsel %vm766_vm6, %v856_v37, 0  ;;  %v1355_v37 = vld [vmem:[%s1903_s11 + $0x28] sm:$0xff] }
 0x3a7   : > { %v721_v54 = vsel %vm718_vm14, %v720_v51, %v716_v52  ;;  %898 = vmatpush.bf16.msrb.mxu2 %v889_v38 }
 0x3a8   : > { %v754_v56 = vmul.f32 %v1424_v20, %v721_v54  ;;  %v746_v7 = vsel %vm745_vm2, %v1434_v49, %v742_v3 }
 0x3a9   : > { %v751_v9 = vsel %vm748_vm3, %v750_v8, %v746_v7 }
 0x3aa   : > { %v758_v58 = vpack.c.bf16 %v754_v56, %v754_v56  ;;  %v756_v11 = vmul.f32 %v1728_v22, %v751_v9  ;;  %v847_v22 = vsel %vm568_vm5, %v754_v56, 0.0  ;;  %v1349_v9 = vld [vmem:[%s1901_s9 + $0x8] sm:$0xff] }
 0x3ab   : > { %v762_v59 = vpop.permute.xlu0 %761  ;;  %v848_v28 = vadd.f32 %v847_v22, %v846_v26  ;;  %v1413_v26 = vld [vmem:[%s1925_s7] ss:$0 sm:$0xff] }
 0x3ac   : > { %1292 = vmatmul.msk.bf16.vlgmr.msra.gmra.mxu2 %vm568_vm5, %v758_v58  ;;  %v768_v61 = vsel %vm766_vm6, %v762_v59, 0  ;;  %v760_v18 = vpack.c.bf16 %v756_v11, %v756_v11  ;;  %v851_v33 = vsel %vm568_vm5, %v756_v11, 0.0 }
 0x3ad   : > { %777 = vmatpush.bf16.msrb.mxu1 %v768_v61  ;;  %v1412_v61 = vld [vmem:[%s1924_s6] ss:$0 sm:$0xff] }
 0x3ae   : > { %v805_v62 = vpop.permute.xlu1 %804 }
 0x3af   : > { %v810_v1 = vsel %vm766_vm6, %v805_v62, 0 }
 0x3b0   : > { %1291 = vmatmul.msk.bf16.vlgmr.msrb.gmra.mxu1 %vm568_vm5, %v757_v63  ;;  %819 = vmatpush.bf16.msra.mxu3 %v810_v1 }
 0x3b4   : > { %919 = vmatpush.bf16.msrb.mxu3 %v910_v42 }
 0x3b6   : > { %v689_v6 = vpop.xlane.xlu2 %688 }
 0x3b7   : > { %1435 = vrcp.f32 %v689_v6  ;;  %v734_v17 = vand.u32 2147483648, %v689_v6  ;;  %v732_v20 = vand.u32 2147483647, %v689_v6  ;;  %vm728_vm7 = vweird.f32 %v689_v6 }
 0x3b9   : > { %v735_v23 = vor.u32 1.1754944e-38, %v734_v17  ;;  %vm733_vm9 = vcmp.eq.f32.partialorder %v732_v20, 8.507059e+37 }
 0x3bd   : > { %v1436_v10 = vpop.eup %1435 }
 0x3be   : > { %v724_v13 = vmul.f32 %v1436_v10, %v689_v6  ;;  %v826_v14 = vpop.permute.xlu2 %825  ;;  %vm729_vm4 = vweird.f32 %v1436_v10 }
 0x3bf   : > { %v831_v15 = vsel %vm766_vm6, %v826_v14, 0  ;;  %vm730_vm8 = vmor %vm728_vm7, %vm729_vm4 }
 0x3c0   : > { %v725_v16 = vsub.f32 1.0, %v724_v13  ;;  %840 = vmatpush.bf16.msra.mxu0 %v831_v15 }
 0x3c2   : > { %v726_v19 = vmul.f32 %v1436_v10, %v725_v16 }
 0x3c3   : > { %1294 = vmatmul.msk.bf16.vlgmr.msra.gmra.mxu0 %vm568_vm5, %v760_v18 }
 0x3c4   : > { %v727_v21 = vadd.f32 %v1436_v10, %v726_v19  ;;  %940 = vmatpush.bf16.msrb.mxu0 %v931_v40  ;;  %v1354_v40 = vld [vmem:[%s1903_s11 + $0x20] sm:$0xff] }
 0x3c6   : > { %v731_v24 = vsel %vm730_vm8, %v1436_v10, %v727_v21 }
 0x3c7   : > { %v736_v25 = vsel %vm733_vm9, %v735_v23, %v731_v24 }
 0x3c8   : > { %v755_v27 = vmul.f32 %v1735_v29, %v736_v25  ;;  %v855_v29 = vld [vmem:[%s1923_s5] sm:$0xf] }
 0x3c9   : > { %v865_v36 = vsel %vm766_vm6, %v855_v29, 0 }
 0x3ca   : > { %v759_v30 = vpack.c.bf16 %v755_v27, %v755_v27  ;;  %v849_v31 = vsel %vm568_vm5, %v755_v27, 0.0  ;;  %874 = vmatpush.bf16.msra.mxu1 %v865_v36 }
 0x3cb   : > { %v850_v32 = vadd.f32 %v849_v31, %v848_v28  ;;  %v1414_v28 = vld [vmem:[%s1900_s8] ss:$0 sm:$0xff] }
 0x3cc   : > { %1293 = vmatmul.msk.bf16.vlgmr.msra.gmra.mxu3 %vm568_vm5, %v759_v30 }
 0x3cd   : > { %v852_v34 = vadd.f32 %v851_v33, %v850_v32  ;;  %v1357_v33 = vld [vmem:[%s1903_s11 + $0x38] sm:$0xff] }
 0x3ce   : > { %1013 = vmatpush.bf16.msrb.mxu1 %v1349_v9  ;;  %1129 = vmatpush.bf16.msra.mxu2 %v1357_v33 }
 0x3cf   : > { %v853_v35 = vmul.f32 0.25, %v852_v34  ;;  %v1415_v34 = vld [vmem:[%s1902_s10] ss:$0 sm:$0xff] }
 0x3d1   : > { %854 = vst.msk [vmem:[%s1760_s26] sm:$0xff] %vm568_vm5, %v853_v35  ;;  %v1356_v35 = vld [vmem:[%s1903_s11 + $0x30] sm:$0xff] }
 0x3d2   : > { %1130 = vmatpush.bf16.msra.mxu2 %v1356_v35 }
 0x3d6   : > { %1131 = vmatpush.bf16.msra.mxu2 %v1355_v37 }
 0x3da   : > { %1132 = vmatpush.bf16.msra.mxu2 %v1354_v40 }
 0x42d   : > { %v779_v43 = vpop.f32.mrf.mxu1 }
 0x42e   : > { %v860_v44 = vpack.c.bf16 %v779_v43, %v779_v43 }
 0x42f   : > { %v800_v45 = vpop.f32.mrf.mxu2 }
 0x430   : > { %v884_v46 = vpack.c.bf16 %v800_v45, %v800_v45  ;;  %1295 = vmatmul.msk.bf16.vlgmr.msra.gmra.mxu1 %vm568_vm5, %v860_v44  ;;  %v1353_v44 = vld [vmem:[%s1903_s11 + $0x18] sm:$0xff]  ;;  %v1352_v45 = vld [vmem:[%s1903_s11 + $0x10] sm:$0xff] }
 0x431   : > { %1133 = vmatpush.bf16.msra.mxu2 %v1353_v44 }
 0x432   : > { %1296 = vmatmul.msk.bf16.vlgmr.msrb.gmra.mxu2 %vm568_vm5, %v884_v46 }
 0x435   : > { %v781_v47 = vpop.f32.mrf.mxu1  ;;  %1134 = vmatpush.bf16.msra.mxu2 %v1352_v45 }
 0x437   : > { %v802_v48 = vpop.f32.mrf.mxu2 }
 0x438   : > { %v1351_v48 = vld [vmem:[%s1903_s11 + $0x8] sm:$0xff] }
 0x439   : > { %1135 = vmatpush.bf16.msra.mxu2 %v1351_v48 }
 0x440   : > { %v842_v49 = vpop.f32.mrf.mxu0 }
 0x441   : > { %v926_v50 = vpack.c.bf16 %v842_v49, %v842_v49 }
 0x443   : > { %1298 = vmatmul.msk.bf16.vlgmr.msrb.gmra.mxu0 %vm568_vm5, %v926_v50 }
 0x448   : > { %v844_v51 = vpop.f32.mrf.mxu0 }
 0x44f   : > { %v821_v52 = vpop.f32.mrf.mxu3 }
 0x450   : > { %v905_v53 = vpack.c.bf16 %v821_v52, %v821_v52 }
 0x452   : > { %1297 = vmatmul.msk.bf16.vlgmr.msrb.gmra.mxu3 %vm568_vm5, %v905_v53  ;;  %v1350_v53 = vld [vmem:[%s1903_s11] sm:$0xff] }
 0x453   : > { %1136 = vmatpush.bf16.msra.mxu2 %v1350_v53 }
 0x457   : > { %v823_v54 = vpop.f32.mrf.mxu3 }
 0x4ad   : > { %v876_v55 = vpop.f32.mrf.mxu1 }
 0x4ae   : > { %v883_v62 = vadd.f32 %v1412_v61, %v876_v55 }
 0x4b5   : > { %v878_v56 = vpop.f32.mrf.mxu1  ;;  %v900_v57 = vpop.f32.mrf.mxu2 }
 0x4b6   : > { %v904_v63 = vadd.f32 %v900_v57, %v883_v62 }
 0x4bd   : > { %v902_v58 = vpop.f32.mrf.mxu2 }
 0x4c0   : > { %v942_v59 = vpop.f32.mrf.mxu0 }
 0x4c8   : > { %v944_v60 = vpop.f32.mrf.mxu0 }
 0x4d5   : > { %v921_v1 = vpop.f32.mrf.mxu3 }
 0x4d6   : > { %v925_v2 = vadd.f32 %v921_v1, %v904_v63 }
 0x4d8   : > { %v946_v3 = vadd.f32 %v942_v59, %v925_v2 }
 0x4da   : > { %v1788_v4 = vadd.f32 %v946_v3, %v1674_v0  ;;  %v1348_v0 = vld [vmem:[%s1901_s9] sm:$0xff] }
 0x4db   : > { %1014 = vmatpush.bf16.msrb.mxu1 %v1348_v0 }
 0x4dc   : > { %v950_v5 = vsel %vm478_vm0, %v1788_v4, 0.0  ;;  %v954_v6 = vmul.f32 %v1788_v4, %v1788_v4 }
 0x4dd   : > { %951 = vadd.xlane.f32.xlu0 %v950_v5  ;;  %v923_v7 = vpop.f32.mrf.mxu3 }
 0x4de   : > { %v955_v8 = vsel %vm478_vm0, %v954_v6, 0.0 }
 0x4df   : > { %956 = vadd.xlane.f32.xlu1 %v955_v8 }
 0x550   : > { %v952_v10 = vpop.xlane.xlu0 %951 }
 0x551   : > { %v953_v11 = vmul.f32 %v952_v10, %v1684_v12  ;;  %v1545_v10 = vmov -1.0  }
 0x552   : > { %v957_v13 = vpop.xlane.xlu1 %956 }
 0x553   : > { %v959_v14 = vmul.f32 %v953_v11, %v953_v11  ;;  %v958_v15 = vmul.f32 %v957_v13, %v1684_v12  ;;  %v962_v25 = vsub.f32 %v1788_v4, %v953_v11 }
 0x555   : > { %v960_v16 = vsub.f32 %v958_v15, %v959_v14 }
 0x557   : > { %v961_v17 = vmax.f32 %v960_v16, 0.0 }
 0x559   : > { %v963_v18 = vadd.f32 1e-05, %v961_v17 }
 0x55b   : > { %1437 = vrsqrt.f32 %v963_v18  ;;  %vm970_vm6 = vweird.f32 %v963_v18 }
 0x561   : > { %v1438_v19 = vpop.eup %1437 }
 0x562   : > { %v965_v20 = vmul.f32 %v1438_v19, %v963_v18  ;;  %vm971_vm5 = vweird.f32 %v1438_v19 }
 0x563   : > { %vm972_vm10 = vmor %vm970_vm6, %vm971_vm5 }
 0x564   : > { %v966_v21 = vmul.f32 %v1438_v19, %v965_v20 }
 0x566   : > { %v967_v23 = vmul.f32 0.5, %v966_v21 }
 0x568   : > { %v968_v22 = vsub.f32 1.5, %v967_v23 }
 0x56a   : > { %v969_v24 = vmul.f32 %v1438_v19, %v968_v22 }
 0x56c   : > { %v973_v12 = vsel %vm972_vm10, %v1438_v19, %v969_v24 }
 0x56d   : > { %v974_v27 = vmul.f32 %v973_v12, %v962_v25 }
 0x56f   : > { %v978_v30 = vmul.f32 %v1413_v26, %v974_v27 }
 0x571   : > { %v982_v31 = vadd.f32 %v1414_v28, %v978_v30 }
 0x573   : > { %v983_v32 = vpack.c.bf16 %v982_v31, %v982_v31 }
 0x575   : > { %1307 = vmatmul.msk.bf16.vlgmr.msrb.gmra.mxu1 %vm478_vm0, %v983_v32 }
 0x5f2   : > { %v1016_v29 = vpop.f32.mrf.mxu1 }
 0x5f3   : > { %v1017_v36 = vadd.f32 %v1415_v34, %v1016_v29 }
 0x5f5   : > { %v1021_v38 = vmul.f32 0.70710677, %v1017_v36  ;;  %v1020_v14 = vmul.f32 0.5, %v1017_v36 }
 0x5f7   : > { %v1024_v39 = vand.u32 2147483647, %v1021_v38  ;;  %vm1022_vm15 = vcmp.ge.f32.partialorder %v1021_v38, 0.0 }
 0x5f8   : > { %v1023_v11 = vsel %vm1022_vm15, 1.0, %v1545_v10 }
 0x5f9   : > { %v1025_v41 = vmul.f32 0.3275911, %v1024_v39  ;;  %v1051_v58 = vsub.f32 0.0, %v1024_v39 }
 0x5fa   : > { %v1018_v42 = vpop.f32.mrf.mxu1 }
 0x5fb   : > { %v1026_v43 = vadd.f32 1.0, %v1025_v41  ;;  %v1052_v61 = vmul.f32 %v1051_v58, %v1024_v39 }
 0x5fd   : > { %1439 = vrcp.f32 %v1026_v43  ;;  %v1038_v50 = vand.u32 2147483648, %v1026_v43  ;;  %v1036_v52 = vand.u32 2147483647, %v1026_v43  ;;  %vm1032_vm12 = vweird.f32 %v1026_v43 }
 0x5fe   : > { %v1053_v1 = vmul.f32 1.442695, %v1052_v61 }
 0x5ff   : > { %v1039_v55 = vor.u32 1.1754944e-38, %v1038_v50  ;;  %vm1037_vm14 = vcmp.eq.f32.partialorder %v1036_v52, 8.507059e+37 }
 0x600   : > { %1441 = vpow2.f32 %v1053_v1 }
 0x603   : > { %v1440_v46 = vpop.eup %1439 }
 0x604   : > { %v1028_v47 = vmul.f32 %v1440_v46, %v1026_v43  ;;  %vm1033_vm11 = vweird.f32 %v1440_v46 }
 0x605   : > { %vm1034_vm13 = vmor %vm1032_vm12, %vm1033_vm11 }
 0x606   : > { %v1029_v49 = vsub.f32 1.0, %v1028_v47  ;;  %v1442_v8 = vpop.eup %1441 }
 0x608   : > { %v1030_v51 = vmul.f32 %v1440_v46, %v1029_v49 }
 0x60a   : > { %v1031_v54 = vadd.f32 %v1440_v46, %v1030_v51 }
 0x60c   : > { %v1035_v56 = vsel %vm1034_vm13, %v1440_v46, %v1031_v54 }
 0x60d   : > { %v1040_v57 = vsel %vm1037_vm14, %v1039_v55, %v1035_v56 }
 0x60e   : > { %v1042_v59 = vmul.f32 1.0614054, %v1040_v57 }
 0x610   : > { %v1043_v60 = vadd.f32 -1.4531521, %v1042_v59 }
 0x612   : > { %v1044_v62 = vmul.f32 %v1043_v60, %v1040_v57 }
 0x614   : > { %v1045_v63 = vadd.f32 1.4214138, %v1044_v62 }
 0x616   : > { %v1046_v2 = vmul.f32 %v1045_v63, %v1040_v57 }
 0x618   : > { %v1047_v3 = vadd.f32 -0.28449672, %v1046_v2 }
 0x61a   : > { %v1048_v5 = vmul.f32 %v1047_v3, %v1040_v57 }
 0x61c   : > { %v1049_v6 = vadd.f32 0.2548296, %v1048_v5 }
 0x61e   : > { %v1050_v7 = vmul.f32 %v1049_v6, %v1040_v57 }
 0x620   : > { %v1055_v9 = vmul.f32 %v1442_v8, %v1050_v7 }
 0x622   : > { %v1056_v0 = vsub.f32 1.0, %v1055_v9 }
 0x624   : > { %v1057_v13 = vmul.f32 %v1056_v0, %v1023_v11 }
 0x626   : > { %v1058_v15 = vadd.f32 1.0, %v1057_v13 }
 0x628   : > { %v1059_v16 = vmul.f32 %v1058_v15, %v1020_v14 }
 0x62a   : > { %v1060_v17 = vpack.c.bf16 %v1059_v16, %v1059_v16 }
 0x62c   : > { %1137 = vmatmul.bf16.vlgmr.msra.gmra.mxu2 %v1060_v17 }
 0x62d   : > { %1470 = shalt.err (!%p1467_p3)
}
 0x62e   : > { %1359 = dma.vmem_to_hbm [thread:$0]  (%p1659_p5), %s1177_s1, 128, %s1179_s25, %s1150_s28   ;;  %v1416_v18 = vld [vmem:[%s1904_s12] ss:$0 sm:$0xff] }
 0x62f   : > { %s1160_s5 = scalar_lea.hbm %s1905_s13, %s1342_s2  ;;  %s1926_s6 = sshll.u32 %s1752_s21, 3 }
 0x630   : > { %s462_s3 = scalar_lea.vmem [#allocation2], %s1926_s6  ;;  %s1164_s0 = sshll.u32 %s1160_s5, 4  ;;  %s1165_s0 = int_to_ptr.hbm [resolvable:$true] %s1164_s0 }
 0x631   : > { %s1162_s7 = sshll.u32 %s462_s3, 4  ;;  %s1145_s1 = scalar_lea.sflag [#allocation3], %s1752_s21  ;;  %s1163_s7 = int_to_ptr.vmem [resolvable:$true] %s1162_s7 }
 0x632   : > { %s1485_s25 = sshra.s32 %s1165_s0, 4  ;;  %s1491_s17 = scalar_lea.hbm %s1905_s13, 16  ;;  %s1486_s25 = int_to_ptr.hbm [resolvable:$true] %s1485_s25 }
 0x633   : > { %s1487_s28 = scalar_lea.hbm %s1486_s25, 8  ;;  %p1492_p9 = scmp.lt.s32.totalorder %s1486_s25, %s1905_s13 }
 0x634   : > { %p1488_p4 = scmp.ne.s32.totalorder %s1486_s25, %s1487_s28  ;;  %p1493_p10 = scmp.lt.s32.totalorder %s1491_s17, %s1487_s28 }
 0x636   : > { %p1489_p7 = pnand %p1488_p4, %p1659_p5  ;;  %p1494_p11 = por %p1493_p10, %p1492_p9 }
 0x638   : > { %p1490_p8 = pneg %p1489_p7 }
 0x63a   : > { %p1495_p12 = pnand %p1494_p11, %p1490_p8 }
 0x6af   : > { %v1138_v19 = vpop.f32.mrf.mxu2 }
 0x6b0   : > { %v1139_v20 = vadd.f32 %v1416_v18, %v1138_v19 }
 0x6b2   : > { %v1142_v21 = vadd.f32 %v1139_v20, %v1788_v4 }
 0x6b4   : > { %1143 = vst.msk [vmem:[%s462_s3] sm:$0xff] %vm478_vm0, %v1142_v21 }
 0x6b5   : > { %1498 = shalt.err (!%p1495_p12)
}
 0x6b6   : > { %1358 = dma.vmem_to_hbm [thread:$0]  (%p1659_p5), %s1163_s7, 128, %s1165_s0, %s1145_s1  }
 0x6b7   : > { %v1140_v4 = vpop.f32.mrf.mxu2 }
 0x6b8 PF: > { %p1369_p13 = scmp.ge.s32.totalorder %s1537_s16, 2  ;;  %s1190_s21 = sand.u32 1, %s1525_s29  }
 0x6b9   : > { %s1191_s27 = scalar_lea.sflag [#allocation3], %s1190_s21 }
 0x6ba   : > { %p1363_p0 = pnand %p1369_p13, %p1663_p6 }
 0x6bc   : > { %p1364_p1 = pneg %p1363_p0 }
 0x6be   : > { %1516 = dma.done.wait (%p1364_p1), %s1191_s27, 128  }
 0x6bf   : > { %1518 = vsyncadd (%p1364_p1), %s1191_s27, 4294967168  ;;  %s1201_s4 = scalar_lea.sflag [#allocation5], %s1190_s21 }
 0x6c0   : > { %1520 = dma.done.wait (%p1364_p1), %s1201_s4, 128  }
 0x6c1   : > { %1522 = vsyncadd (%p1364_p1), %s1201_s4, 4294967168  ;;  %p28_p5 = scmp.ge.s32.totalorder %s1646_s19, 4   ;;  %s1927_s29 = smov %s1529_s30 }
 0x6c2   : > { %s1928_s30 = smov %s1533_s15  ;;  %s1929_s15 = smov %s1657_s22 }
 0x6c3   : > { %s1930_s16 = smov %s1646_s19  ;;  %30 = sbr.rel (!%p28_p5) target bundleno = 14 (0xe), region = 124 }
 0x6c8   :  { %1207 = vsyncpa [#allocation3], 1 }
 0x6c9   :  { %1209 = vsyncpa [#allocation3 + $0x1], 1 }
 0x6ca   :  { %1210 = vsyncpa [#allocation5], 1 }
 0x6cb   :  { %1212 = vsyncpa [#allocation5 + $0x1], 1 }

</bundles_post_ra>
